<compile_context>
chip_gen: v5e
topology: v5e:2x2
jax: 0.10.0
libtpu: 0.0.40
codegen_flags: <defaults>
</compile_context>

<pallas_src>
from typing import NamedTuple

import jax
import jax.numpy as jnp
import numpy as np
from jax.experimental import pallas as pl
from jax.experimental.pallas import tpu as pltpu


def _round_up(x, m):
    return ((x + m - 1) // m) * m


def _pick_tb(B):
    # Batch tile: small enough that per-step VMEM stays tiny, large enough to
    # amortize the ~0.35us per-step overhead; prefer >= 2 grid steps so both
    # v7x TensorCores get work on the "parallel" batch axis.
    for tb in (8, 4, 2, 1):
        if B % tb == 0 and B // tb >= 2:
            return tb
    return B


class GCAEConfig(NamedTuple):
    K_max: int
    C: int
    nb: int
    CW: int
    H: int
    NT: int
    L1P: int
    NOP: int
    n_out: int


# ----------------------------- fused Pallas kernel ---------------------------

def _make_kernel(TB, H, KCW, C, nb, NT, Lt):
    inv_lt = np.float32(1.0 / Lt)

    def kernel(p_ref, tw_ref, v_ref, wt_ref, wr_ref, bt_ref, br_ref, mask_ref,
               w1_ref, b1_ref, w2_ref, b2_ref, o_ref):
        # ---- all 2*nb conv branches: two lane-aligned im2col matmuls ---------
        lhs = p_ref[...]                                              # [TB*H, K_max*CW]
        s_t = jnp.dot(lhs, wt_ref[...],
                      preferred_element_type=jnp.float32) + bt_ref[...]   # [TB*H, NT]
        s_r = jnp.dot(lhs, wr_ref[...],
                      preferred_element_type=jnp.float32) + br_ref[...]   # [TB*H, NT]

        # ---- target-word projection (mean over Lt fused in-kernel) -----------
        tw = jnp.sum(tw_ref[...], axis=1) * inv_lt                    # [TB, 1024]
        tv = jnp.dot(tw, v_ref[...],
                     preferred_element_type=jnp.float32)              # [TB, C]
        tvt = jnp.concatenate([tv] * nb, axis=1)                      # [TB, NT] (lane tile)

        # ---- gating + k=1 max pooling, batched over the whole tile -----------
        g = (jnp.tanh(s_t).reshape(TB, H, NT)
             * jnp.maximum(s_r.reshape(TB, H, NT) + tvt[:, None, :], 0.0))
        # additive -1e30 mask (f32) zeroes out positions past each branch's
        # valid conv output length before the max.
        pooled = jnp.max(g + mask_ref[...], axis=1)                   # [TB, NT]

        # ---- MLP head (nn.Dropout is identity at inference) ------------------
        h = jnp.maximum(jnp.dot(pooled, w1_ref[...],
                                preferred_element_type=jnp.float32) + b1_ref[...],
                        0.0)                                          # [TB, L1P]
        out = jnp.dot(h, w2_ref[...],
                      preferred_element_type=jnp.float32) + b2_ref[...]   # [TB, NOP]
        # o_ref is [1, TB, NOP]; adding a leading unit dim is layout-free.
        o_ref[...] = out.reshape(o_ref.shape)

    return kernel


# ----------------------------- param preparation -----------------------------

def prepare_params(params, in_channels, out_channels, H, n_out=3):
    """One-time weight flattening / padding / concatenation (hoisted off the
    per-call path)."""
    ks = params['kernel_sizes']
    nb = len(ks)
    K_max = max(K for K, _ in ks)
    W = ks[0][1]
    CW = in_channels * W
    C = out_channels
    NT = nb * C

    for K, Kw in ks:
        assert Kw == W, "all branches must span the full embedding width"
        assert K <= H, "branch kernel height exceeds sequence length"

    def flat(w, K):
        # torch conv weight [C, Cin, K, W] -> zero-pad K to K_max ->
        # [K_max*Cin*W, C] with row ordering (kh, cin, w) matching patch cols.
        w_pad = jnp.pad(w, ((0, 0), (0, 0), (0, K_max - K), (0, 0)))
        return jnp.transpose(w_pad, (2, 1, 3, 0)).reshape(K_max * CW, C)

    w_t = jnp.concatenate([flat(w, K) for (K, _), w in zip(ks, params['w_tanh'])],
                          axis=1)                                     # [K_max*CW, NT]
    w_r = jnp.concatenate([flat(w, K) for (K, _), w in zip(ks, params['w_relu'])],
                          axis=1)
    b_t = jnp.concatenate([b.reshape(1, C) for b in params['b_tanh']], axis=1)
    b_r = jnp.concatenate([b.reshape(1, C) for b in params['b_relu']], axis=1)

    # additive mask: 0 for valid conv output positions, -1e30 past each branch's L
    mask = np.zeros((1, H, NT), np.float32)
    for i, (K, _) in enumerate(ks):
        L = H - K + 1
        mask[0, L:, i * C:(i + 1) * C] = -1e30
    mask = jnp.asarray(mask)

    # lane-pad the MLP head so the hidden activation and output store are
    # unmasked; padded columns/rows are exact zeros so the math is unchanged.
    L1 = params['w1'].shape[0]
    L1P = _round_up(L1, 128)
    NOP = _round_up(n_out, 128)
    w1t = jnp.zeros((NT, L1P), jnp.float32).at[:, :L1].set(params['w1'].T)
    b1 = jnp.zeros((1, L1P), jnp.float32).at[:, :L1].set(params['b1'])
    w2t = jnp.zeros((L1P, NOP), jnp.float32).at[:L1, :n_out].set(params['w2'].T)
    b2 = jnp.zeros((1, NOP), jnp.float32).at[:, :n_out].set(params['b2'])

    cfg = GCAEConfig(K_max=K_max, C=C, nb=nb, CW=CW, H=H, NT=NT,
                     L1P=L1P, NOP=NOP, n_out=n_out)
    weights = dict(V=params['V'], w_t=w_t, w_r=w_r, b_t=b_t, b_r=b_r, mask=mask,
                   w1t=w1t, b1=b1, w2t=w2t, b2=b2)
    return cfg, weights


# ----------------------------- forward wrapper --------------------------------

def make_gcae_forward(cfg: GCAEConfig):
    K_max, C, nb, CW, H = cfg.K_max, cfg.C, cfg.nb, cfg.CW, cfg.H
    NT, L1P, NOP, n_out = cfg.NT, cfg.L1P, cfg.NOP, cfg.n_out
    KCW = K_max * CW

    @jax.jit
    def forward(weights, x, target_word):
        B, Cin, Hx, W = x.shape
        assert Hx == H and Cin * W == CW

        # target_word: [B, 1, Lt, 1024] -> [B, Lt, 1024]; mean over Lt happens
        # inside the kernel (fused with the V projection).
        tw = jnp.squeeze(target_word, axis=1)
        Lt = tw.shape[1]
        if Lt == 300:
            # TODO(synk): torch's Lt == 300 branch feeds a 3-D tensor to
            # torch.mm and cannot execute; only the averaging path is built.
            raise NotImplementedError("target_word with Lt == 300 not supported")

        # lane-dense im2col patches [B*H, K_max*Cin*W], column order (kh, cin, w);
        # a single fused XLA expression under jit (x is read exactly once here).
        x_rows = jnp.transpose(x, (0, 2, 1, 3)).reshape(B, H, CW)
        x_pad = jnp.pad(x_rows, ((0, 0), (0, K_max - 1), (0, 0)))
        patches = jnp.concatenate(
            [x_pad[:, kh:kh + H, :] for kh in range(K_max)], axis=2
        ).reshape(B * H, KCW)

        TB = _pick_tb(B)
        kernel = _make_kernel(TB, H, KCW, C, nb, NT, Lt)

        grid_spec = pltpu.PrefetchScalarGridSpec(
            num_scalar_prefetch=0,
            grid=(B // TB,),
            in_specs=[
                pl.BlockSpec((TB * H, KCW), lambda b: (b, 0)),        # im2col patches
                pl.BlockSpec((TB, Lt, 1024), lambda b: (b, 0, 0)),    # target word
                pl.BlockSpec((1024, C), lambda b: (0, 0)),            # V (un-tiled)
                pl.BlockSpec((KCW, NT), lambda b: (0, 0)),            # conv W (tanh)
                pl.BlockSpec((KCW, NT), lambda b: (0, 0)),            # conv W (relu)
                pl.BlockSpec((1, NT), lambda b: (0, 0)),              # tanh bias
                pl.BlockSpec((1, NT), lambda b: (0, 0)),              # relu bias
                pl.BlockSpec((1, H, NT), lambda b: (0, 0, 0)),        # pooling mask
                pl.BlockSpec((NT, L1P), lambda b: (0, 0)),            # w1^T (lane-padded)
                pl.BlockSpec((1, L1P), lambda b: (0, 0)),             # b1   (lane-padded)
                pl.BlockSpec((L1P, NOP), lambda b: (0, 0)),           # w2^T (lane-padded)
                pl.BlockSpec((1, NOP), lambda b: (0, 0)),             # b2   (lane-padded)
            ],
            out_specs=pl.BlockSpec((1, TB, NOP), lambda b: (b, 0, 0)),
        )

        out = pl.pallas_call(
            kernel,
            out_shape=jax.ShapeDtypeStruct((B // TB, TB, NOP), jnp.float32),
            grid_spec=grid_spec,
            compiler_params=pltpu.CompilerParams(
                dimension_semantics=("parallel",)),
        )(patches, tw, weights['V'], weights['w_t'], weights['w_r'],
          weights['b_t'], weights['b_r'], weights['mask'],
          weights['w1t'], weights['b1'], weights['w2t'], weights['b2'])

        # padded columns are exact zeros; slice back to the 3 logits.
        return out.reshape(B, NOP)[:, :n_out]

    return forward


# ----------------------------- pure-JAX reference -----------------------------

def _im2col(x, K):
    B, Cin, H, W = x.shape
    L = H - K + 1
    cols = jnp.stack([x[:, :, t:t + K, :] for t in range(L)], axis=1)
    return cols.reshape(B, L, Cin * K * W)


def gcae_reference(params, x, target_word, out_channels):
    tw = jnp.squeeze(target_word, axis=1)
    if tw.shape[1] != 300:
        tw = jnp.sum(tw, axis=1) / tw.shape[1]
    tv = tw @ params['V']
    pooled = []
    for (K, _), wt, bt, wr, br in zip(params['kernel_sizes'], params['w_tanh'],
                                      params['b_tanh'], params['w_relu'], params['b_relu']):
        patches = _im2col(x, K)
        D = patches.shape[-1]
        st = jnp.tanh(patches @ wt.reshape(out_channels, D).T + bt)
        sr = jnp.maximum(patches @ wr.reshape(out_channels, D).T + br + tv[:, None, :], 0.0)
        pooled.append(jnp.max(st * sr, axis=1))              # kmax pooling, k=1
    cat = jnp.concatenate(pooled, axis=1)
    h = jnp.maximum(cat @ params['w1'].T + params['b1'], 0.0)
    return h @ params['w2'].T + params['b2']


# ----------------------------- init ------------------------------------------

def init_params(key, in_channels, out_channels, linear_size, kernel_sizes):
    n = len(kernel_sizes)
    keys = jax.random.split(key, 4 * n + 5)
    idx = 0
    w_tanh, b_tanh, w_relu, b_relu = [], [], [], []
    for (K, Kw) in kernel_sizes:
        w_tanh.append(0.05 * jax.random.normal(keys[idx], (out_channels, in_channels, K, Kw), jnp.float32)); idx += 1
        b_tanh.append(0.05 * jax.random.normal(keys[idx], (out_channels,), jnp.float32)); idx += 1
        w_relu.append(0.05 * jax.random.normal(keys[idx], (out_channels, in_channels, K, Kw), jnp.float32)); idx += 1
        b_relu.append(0.05 * jax.random.normal(keys[idx], (out_channels,), jnp.float32)); idx += 1
    V = jax.random.uniform(keys[idx], (1024, out_channels), jnp.float32); idx += 1  # torch.rand
    w1 = 0.05 * jax.random.normal(keys[idx], (linear_size, out_channels * 4), jnp.float32); idx += 1
    b1 = 0.05 * jax.random.normal(keys[idx], (linear_size,), jnp.float32); idx += 1
    w2 = 0.05 * jax.random.normal(keys[idx], (3, linear_size), jnp.float32); idx += 1
    b2 = 0.05 * jax.random.normal(keys[idx], (3,), jnp.float32); idx += 1
    return dict(kernel_sizes=kernel_sizes, w_tanh=w_tanh, b_tanh=b_tanh,
                w_relu=w_relu, b_relu=b_relu, V=V, w1=w1, b1=b1, w2=w2, b2=b2)


if __name__ == "__main__":
    key = jax.random.PRNGKey(0)
    in_channels, out_channels, linear_size = 1, 8, 16
    embed_dim = 32
    kernel_sizes = [(2, embed_dim), (3, embed_dim), (4, embed_dim), (5, embed_dim)]
    B, H = 2, 16   # batch, sequence length

    k_p, k_x, k_t = jax.random.split(key, 3)
    params = init_params(k_p, in_channels, out_channels, linear_size, kernel_sizes)
    cfg, weights = prepare_params(params, in_channels, out_channels, H)

    x = jax.random.normal(k_x, (B, in_channels, H, embed_dim), dtype=jnp.float32)
    # target_word: [B, 1, Lt, 1024]; Lt != 300 so forward averages over Lt
    target_word = jax.random.normal(k_t, (B, 1, 5, 1024), dtype=jnp.float32)

    forward = make_gcae_forward(cfg)
    out = forward(weights, x, target_word)
    out = jax.block_until_ready(out)

    ref = gcae_reference(params, x, target_word, out_channels)
    np.testing.assert_allclose(np.asarray(out), np.asarray(ref), rtol=2e-3, atol=2e-3)
    assert out.shape == (B, 3)
    print("KERNEL_OK")
</pallas_src>

<mosaic_0001>
module attributes {stable_mosaic.version = 11 : i64} {
  func.func @kernel(%arg0: i32, %arg1: memref<16x160xf32, #tpu.memory_space<vmem>>, %arg2: memref<1x5x1024xf32, #tpu.memory_space<vmem>>, %arg3: memref<1024x8xf32, #tpu.memory_space<vmem>>, %arg4: memref<160x32xf32, #tpu.memory_space<vmem>>, %arg5: memref<160x32xf32, #tpu.memory_space<vmem>>, %arg6: memref<1x32xf32, #tpu.memory_space<vmem>>, %arg7: memref<1x32xf32, #tpu.memory_space<vmem>>, %arg8: memref<1x16x32xf32, #tpu.memory_space<vmem>>, %arg9: memref<32x128xf32, #tpu.memory_space<vmem>>, %arg10: memref<1x128xf32, #tpu.memory_space<vmem>>, %arg11: memref<128x128xf32, #tpu.memory_space<vmem>>, %arg12: memref<1x128xf32, #tpu.memory_space<vmem>>, %arg13: memref<1x1x128xf32, #tpu.memory_space<vmem>>) attributes {dimension_semantics = [#tpu.dimension_semantics<parallel>], iteration_bounds = array<i64: 2>, scalar_prefetch = 0 : i64, scratch_operands = 0 : i64, tpu.core_type = #tpu.core_type<tc>, window_params = [{transform_indices = @transform_0, window_bounds = array<i64: 16, 160>}, {transform_indices = @transform_1, window_bounds = array<i64: 1, 5, 1024>}, {pipeline_mode = #tpu.pipeline_mode<synchronous>, transform_indices = @transform_2, window_bounds = array<i64: 1024, 8>}, {pipeline_mode = #tpu.pipeline_mode<synchronous>, transform_indices = @transform_3, window_bounds = array<i64: 160, 32>}, {pipeline_mode = #tpu.pipeline_mode<synchronous>, transform_indices = @transform_4, window_bounds = array<i64: 160, 32>}, {pipeline_mode = #tpu.pipeline_mode<synchronous>, transform_indices = @transform_5, window_bounds = array<i64: 1, 32>}, {pipeline_mode = #tpu.pipeline_mode<synchronous>, transform_indices = @transform_6, window_bounds = array<i64: 1, 32>}, {pipeline_mode = #tpu.pipeline_mode<synchronous>, transform_indices = @transform_7, window_bounds = array<i64: 1, 16, 32>}, {pipeline_mode = #tpu.pipeline_mode<synchronous>, transform_indices = @transform_8, window_bounds = array<i64: 32, 128>}, {pipeline_mode = #tpu.pipeline_mode<synchronous>, transform_indices = @transform_9, window_bounds = array<i64: 1, 128>}, {pipeline_mode = #tpu.pipeline_mode<synchronous>, transform_indices = @transform_10, window_bounds = array<i64: 128, 128>}, {pipeline_mode = #tpu.pipeline_mode<synchronous>, transform_indices = @transform_11, window_bounds = array<i64: 1, 128>}, {transform_indices = @transform_12, window_bounds = array<i64: 1, 1, 128>}]} {
    %c0 = arith.constant 0 : index
    %c0_0 = arith.constant 0 : index
    %0 = vector.load %arg1[%c0, %c0_0] : memref<16x160xf32, #tpu.memory_space<vmem>>, vector<16x160xf32>
    %c0_1 = arith.constant 0 : index
    %c0_2 = arith.constant 0 : index
    %1 = vector.load %arg4[%c0_1, %c0_2] : memref<160x32xf32, #tpu.memory_space<vmem>>, vector<160x32xf32>
    %cst = arith.constant dense<0.000000e+00> : vector<16x32xf32>
    %2 = tpu.matmul %0, %1, %cst {dimension_numbers = #tpu.dot_dimension_numbers<[1], [0], [0], [1], [0, 0, 1, 1], [], []>} : vector<16x160xf32>, vector<160x32xf32>, vector<16x32xf32> -> vector<16x32xf32>
    %c0_3 = arith.constant 0 : index
    %c0_4 = arith.constant 0 : index
    %3 = vector.load %arg6[%c0_3, %c0_4] : memref<1x32xf32, #tpu.memory_space<vmem>>, vector<1x32xf32>
    %4 = vector.broadcast %3 : vector<1x32xf32> to vector<16x32xf32>
    %5 = arith.addf %2, %4 : vector<16x32xf32>
    %c0_5 = arith.constant 0 : index
    %c0_6 = arith.constant 0 : index
    %6 = vector.load %arg5[%c0_5, %c0_6] : memref<160x32xf32, #tpu.memory_space<vmem>>, vector<160x32xf32>
    %cst_7 = arith.constant dense<0.000000e+00> : vector<16x32xf32>
    %7 = tpu.matmul %0, %6, %cst_7 {dimension_numbers = #tpu.dot_dimension_numbers<[1], [0], [0], [1], [0, 0, 1, 1], [], []>} : vector<16x160xf32>, vector<160x32xf32>, vector<16x32xf32> -> vector<16x32xf32>
    %c0_8 = arith.constant 0 : index
    %c0_9 = arith.constant 0 : index
    %8 = vector.load %arg7[%c0_8, %c0_9] : memref<1x32xf32, #tpu.memory_space<vmem>>, vector<1x32xf32>
    %9 = vector.broadcast %8 : vector<1x32xf32> to vector<16x32xf32>
    %10 = arith.addf %7, %9 : vector<16x32xf32>
    %c0_10 = arith.constant 0 : index
    %c0_11 = arith.constant 0 : index
    %c0_12 = arith.constant 0 : index
    %11 = vector.load %arg2[%c0_10, %c0_11, %c0_12] : memref<1x5x1024xf32, #tpu.memory_space<vmem>>, vector<1x5x1024xf32>
    %cst_13 = arith.constant dense<0.000000e+00> : vector<1x1024xf32>
    %12 = vector.multi_reduction <add>, %11, %cst_13 [1] : vector<1x5x1024xf32> to vector<1x1024xf32>
    %cst_14 = arith.constant 2.000000e-01 : f32
    %13 = vector.broadcast %cst_14 : f32 to vector<1x1024xf32>
    %14 = arith.mulf %12, %13 : vector<1x1024xf32>
    %c0_15 = arith.constant 0 : index
    %c0_16 = arith.constant 0 : index
    %15 = vector.load %arg3[%c0_15, %c0_16] : memref<1024x8xf32, #tpu.memory_space<vmem>>, vector<1024x8xf32>
    %cst_17 = arith.constant dense<0.000000e+00> : vector<1x8xf32>
    %16 = tpu.matmul %14, %15, %cst_17 {dimension_numbers = #tpu.dot_dimension_numbers<[1], [0], [0], [1], [0, 0, 1, 1], [], []>} : vector<1x1024xf32>, vector<1024x8xf32>, vector<1x8xf32> -> vector<1x8xf32>
    %17 = tpu.concatenate %16, %16, %16, %16 in 1 : vector<1x8xf32>, vector<1x8xf32>, vector<1x8xf32>, vector<1x8xf32> -> vector<1x32xf32>
    %18 = math.tanh %5 : vector<16x32xf32>
    %19 = vector.shape_cast %18 : vector<16x32xf32> to vector<1x16x32xf32>
    %20 = vector.shape_cast %10 : vector<16x32xf32> to vector<1x16x32xf32>
    %21 = vector.shape_cast %17 : vector<1x32xf32> to vector<1x1x32xf32>
    %22 = vector.broadcast %21 : vector<1x1x32xf32> to vector<1x16x32xf32>
    %23 = arith.addf %20, %22 : vector<1x16x32xf32>
    %cst_18 = arith.constant 0.000000e+00 : f32
    %24 = vector.broadcast %cst_18 : f32 to vector<1x16x32xf32>
    %25 = arith.maximumf %23, %24 : vector<1x16x32xf32>
    %26 = arith.mulf %19, %25 : vector<1x16x32xf32>
    %c0_19 = arith.constant 0 : index
    %c0_20 = arith.constant 0 : index
    %c0_21 = arith.constant 0 : index
    %27 = vector.load %arg8[%c0_19, %c0_20, %c0_21] : memref<1x16x32xf32, #tpu.memory_space<vmem>>, vector<1x16x32xf32>
    %28 = arith.addf %26, %27 : vector<1x16x32xf32>
    %cst_22 = arith.constant dense<0xFF800000> : vector<1x32xf32>
    %29 = vector.multi_reduction <maximumf>, %28, %cst_22 [1] : vector<1x16x32xf32> to vector<1x32xf32>
    %c0_23 = arith.constant 0 : index
    %c0_24 = arith.constant 0 : index
    %30 = vector.load %arg9[%c0_23, %c0_24] : memref<32x128xf32, #tpu.memory_space<vmem>>, vector<32x128xf32>
    %cst_25 = arith.constant dense<0.000000e+00> : vector<1x128xf32>
    %31 = tpu.matmul %29, %30, %cst_25 {dimension_numbers = #tpu.dot_dimension_numbers<[1], [0], [0], [1], [0, 0, 1, 1], [], []>} : vector<1x32xf32>, vector<32x128xf32>, vector<1x128xf32> -> vector<1x128xf32>
    %c0_26 = arith.constant 0 : index
    %c0_27 = arith.constant 0 : index
    %32 = vector.load %arg10[%c0_26, %c0_27] : memref<1x128xf32, #tpu.memory_space<vmem>>, vector<1x128xf32>
    %33 = arith.addf %31, %32 : vector<1x128xf32>
    %cst_28 = arith.constant 0.000000e+00 : f32
    %34 = vector.broadcast %cst_28 : f32 to vector<1x128xf32>
    %35 = arith.maximumf %33, %34 : vector<1x128xf32>
    %c0_29 = arith.constant 0 : index
    %c0_30 = arith.constant 0 : index
    %36 = vector.load %arg11[%c0_29, %c0_30] : memref<128x128xf32, #tpu.memory_space<vmem>>, vector<128x128xf32>
    %cst_31 = arith.constant dense<0.000000e+00> : vector<1x128xf32>
    %37 = tpu.matmul %35, %36, %cst_31 {dimension_numbers = #tpu.dot_dimension_numbers<[1], [0], [0], [1], [0, 0, 1, 1], [], []>} : vector<1x128xf32>, vector<128x128xf32>, vector<1x128xf32> -> vector<1x128xf32>
    %c0_32 = arith.constant 0 : index
    %c0_33 = arith.constant 0 : index
    %38 = vector.load %arg12[%c0_32, %c0_33] : memref<1x128xf32, #tpu.memory_space<vmem>>, vector<1x128xf32>
    %39 = arith.addf %37, %38 : vector<1x128xf32>
    %40 = vector.shape_cast %39 : vector<1x128xf32> to vector<1x1x128xf32>
    %c0_34 = arith.constant 0 : index
    %c0_35 = arith.constant 0 : index
    %c0_36 = arith.constant 0 : index
    %41 = vector.load %arg13[%c0_34, %c0_35, %c0_36] : memref<1x1x128xf32, #tpu.memory_space<vmem>>, vector<1x1x128xf32>
    tpu.vector_store %arg13[%c0_34, %c0_35, %c0_36], %40 {strides = array<i32>} : memref<1x1x128xf32, #tpu.memory_space<vmem>>, vector<1x1x128xf32>,
    return
  }
  func.func @transform_0(%arg0: i32) -> (i32, i32) {
    %c0_i32 = arith.constant 0 : i32
    %c0_i32_0 = arith.constant 0 : i32
    return %arg0, %c0_i32 : i32, i32
  }
  func.func @transform_1(%arg0: i32) -> (i32, i32, i32) {
    %c0_i32 = arith.constant 0 : i32
    %c0_i32_0 = arith.constant 0 : i32
    %c0_i32_1 = arith.constant 0 : i32
    return %arg0, %c0_i32, %c0_i32_0 : i32, i32, i32
  }
  func.func @transform_2(%arg0: i32) -> (i32, i32) {
    %c0_i32 = arith.constant 0 : i32
    %c0_i32_0 = arith.constant 0 : i32
    %c0_i32_1 = arith.constant 0 : i32
    return %c0_i32, %c0_i32_0 : i32, i32
  }
  func.func @transform_3(%arg0: i32) -> (i32, i32) {
    %c0_i32 = arith.constant 0 : i32
    %c0_i32_0 = arith.constant 0 : i32
    %c0_i32_1 = arith.constant 0 : i32
    return %c0_i32, %c0_i32_0 : i32, i32
  }
  func.func @transform_4(%arg0: i32) -> (i32, i32) {
    %c0_i32 = arith.constant 0 : i32
    %c0_i32_0 = arith.constant 0 : i32
    %c0_i32_1 = arith.constant 0 : i32
    return %c0_i32, %c0_i32_0 : i32, i32
  }
  func.func @transform_5(%arg0: i32) -> (i32, i32) {
    %c0_i32 = arith.constant 0 : i32
    %c0_i32_0 = arith.constant 0 : i32
    %c0_i32_1 = arith.constant 0 : i32
    return %c0_i32, %c0_i32_0 : i32, i32
  }
  func.func @transform_6(%arg0: i32) -> (i32, i32) {
    %c0_i32 = arith.constant 0 : i32
    %c0_i32_0 = arith.constant 0 : i32
    %c0_i32_1 = arith.constant 0 : i32
    return %c0_i32, %c0_i32_0 : i32, i32
  }
  func.func @transform_7(%arg0: i32) -> (i32, i32, i32) {
    %c0_i32 = arith.constant 0 : i32
    %c0_i32_0 = arith.constant 0 : i32
    %c0_i32_1 = arith.constant 0 : i32
    %c0_i32_2 = arith.constant 0 : i32
    return %c0_i32, %c0_i32_0, %c0_i32_1 : i32, i32, i32
  }
  func.func @transform_8(%arg0: i32) -> (i32, i32) {
    %c0_i32 = arith.constant 0 : i32
    %c0_i32_0 = arith.constant 0 : i32
    %c0_i32_1 = arith.constant 0 : i32
    return %c0_i32, %c0_i32_0 : i32, i32
  }
  func.func @transform_9(%arg0: i32) -> (i32, i32) {
    %c0_i32 = arith.constant 0 : i32
    %c0_i32_0 = arith.constant 0 : i32
    %c0_i32_1 = arith.constant 0 : i32
    return %c0_i32, %c0_i32_0 : i32, i32
  }
  func.func @transform_10(%arg0: i32) -> (i32, i32) {
    %c0_i32 = arith.constant 0 : i32
    %c0_i32_0 = arith.constant 0 : i32
    %c0_i32_1 = arith.constant 0 : i32
    return %c0_i32, %c0_i32_0 : i32, i32
  }
  func.func @transform_11(%arg0: i32) -> (i32, i32) {
    %c0_i32 = arith.constant 0 : i32
    %c0_i32_0 = arith.constant 0 : i32
    %c0_i32_1 = arith.constant 0 : i32
    return %c0_i32, %c0_i32_0 : i32, i32
  }
  func.func @transform_12(%arg0: i32) -> (i32, i32, i32) {
    %c0_i32 = arith.constant 0 : i32
    %c0_i32_0 = arith.constant 0 : i32
    %c0_i32_1 = arith.constant 0 : i32
    return %arg0, %c0_i32, %c0_i32_0 : i32, i32, i32
  }
}

</mosaic_0001>

<bundles_post_ra>
// kernel: forward.1
= control target key start
LH: loop header
LB: loop body
LE: loop exit
PB: predicated region body
PF: predicated region fallthrough
CT: control target
= control target key end

     0   :  { %17 = vsyncpa [#allocation3], 0  ;;  %s2063_s0 = inlined_call_operand.vmem [shape: f32[32,160], index: 0, kind: input, shape index: {}]   ;;  %s2064_s1 = inlined_call_operand.vmem [shape: f32[2,5,1024], index: 1, kind: input, shape index: {}]   ;;  %s2065_s2 = inlined_call_operand.vmem [shape: f32[1024,8], index: 2, kind: input, shape index: {}]   ;;  %s2066_s3 = inlined_call_operand.vmem [shape: f32[160,32], index: 3, kind: input, shape index: {}]   ;;  %s2067_s4 = inlined_call_operand.vmem [shape: f32[160,32], index: 4, kind: input, shape index: {}]   ;;  %s2068_s5 = inlined_call_operand.vmem [shape: f32[1,32], index: 5, kind: input, shape index: {}]   ;;  %s2069_s6 = inlined_call_operand.vmem [shape: f32[1,32], index: 6, kind: input, shape index: {}]   ;;  %s2070_s7 = inlined_call_operand.vmem [shape: f32[1,16,32], index: 7, kind: input, shape index: {}]   ;;  %s2071_s8 = inlined_call_operand.vmem [shape: f32[32,128], index: 8, kind: input, shape index: {}]   ;;  %s2072_s9 = inlined_call_operand.vmem [shape: f32[1,128], index: 9, kind: input, shape index: {}]   ;;  %s2073_s10 = inlined_call_operand.vmem [shape: f32[128,128], index: 10, kind: input, shape index: {}]   ;;  %s2074_s11 = inlined_call_operand.vmem [shape: f32[1,128], index: 11, kind: input, shape index: {}]   ;;  %s2075_s12 = inlined_call_operand.hbm [shape: f32[2,1,128], index: 12, kind: output, shape index: {}]  }
   0x1   :  { %19 = vsyncpa [#allocation3 + $0x1], 0  ;;  %s1331_s21 = smov 0   ;;  %s1333_s22 = smov 0  }
   0x2   :  { %s1335_s23 = smov 0   ;;  %s1337_s24 = smov 0  }
   0x3 LB: > { %2079 = sst [smem:[#allocation5_spill]] %s1257_s23  ;;  %s1352_s25 = sadd.s32 4294967295, %s1261_s24   ;;  %s1261_s24 = sphi %s1337_s24, %s2085_s24   ;;  %s1257_s23 = sphi %s1335_s23, %s2087_s23   ;;  %s1253_s22 = sphi %s1333_s22, %s2089_s22   ;;  %s1249_s21 = sphi %s1331_s21, %s2088_s21  }
   0x4   : > { %s1133_s26 = sadd.s32 4294967294, %s1261_s24   ;;  %s1356_s27 = sadd.s32 1, %s1261_s24  }
   0x5   : > { %2080 = sst [smem:[#allocation6_spill]] %s1356_s27  ;;  %s294_s28 = sadd.s32 1, %s1257_s23 }
   0x6   : > { %s291_s29 = ssub.s32 %s1261_s24, %s1356_s27  ;;  %p304_p0 = scmp.ne.s32.totalorder %s1257_s23, %s1253_s22 }
   0x7   : > { %p292_p1 = scmp.eq.s32.totalorder %s291_s29, 0  ;;  %p305_p2 = scmp.eq.s32.totalorder %s1352_s25, 1 }
   0x8   : > { %p310_p3 = scmp.ne.s32.totalorder %s1253_s22, %s1249_s21  ;;  %p311_p4 = scmp.eq.s32.totalorder %s1133_s26, 1 }
   0x9   : > { %s1367_s30 = scalar_select %p292_p1, %s1257_s23, %s294_s28  }
   0xa   : > { %p1369_p5 = por %p305_p2, %p304_p0  ;;  %p1373_p6 = por %p311_p4, %p310_p3 }
   0xb   : > { %2081 = sst [smem:[#allocation7_spill]] %s1367_s30  ;;  %p1136_p7 = scmp.ge.s32.totalorder %s1261_s24, 1 }
   0xc   : > { %p377_p8 = scmp.lt.s32.totalorder %s1261_s24, 3 }
   0xe   : > { %p378_p9 = pnand %p1136_p7, %p377_p8 }
   0xf   : > { %s1137_s17 = sshll.u32 (!%p378_p9), %s1352_s25, 1  ;;  %p431_p11 = scmp.lt.s32.totalorder (!%p378_p9), %s1352_s25, 1 }
  0x10   : > { %381 = sbr.rel (%p378_p9) target bundleno = 669 (0x29d), region = 68  ;;  %p1407_p10 = scmp.lt.s32.totalorder (!%p378_p9), %s1137_s17, 3 }
  0x11   : > { %s1263_s19 = smov (!%p378_p9), 24   ;;  %s1264_s27 = smov (!%p378_p9), 8  }
  0x15   : > { %v455_v0 = vld [vmem:[%s2066_s3 + $0x78] sm:$0xff]  ;;  %v454_v2 = vld [vmem:[%s2066_s3 + $0x70] sm:$0xff]  ;;  %v453_v4 = vld [vmem:[%s2066_s3 + $0x68] sm:$0xff]  ;;  %s2091_s17 = smov (!%p1407_p10, %s1137_s17), 3  ;;  %vm464_vm0 = vcmask 261120   ;;  %vm595_vm1 = vcmask 1044480  }
  0x16   : > { %v532_v1 = vld [vmem:[%s2067_s4 + $0x78] sm:$0xff]  ;;  %471 = vmatpush.msra.mxu0 %v455_v0  ;;  %v531_v3 = vld [vmem:[%s2067_s4 + $0x70] sm:$0xff]  ;;  %v530_v5 = vld [vmem:[%s2067_s4 + $0x68] sm:$0xff]  ;;  %s1149_s30 = sshll.u32 %s2091_s17, 4  ;;  %vm958_vm2 = vcmask 64512   ;;  %vm960_vm3 = vcmask 130048  }
  0x17   : > { %541 = vmatpush.msra.mxu2 %v532_v1  ;;  %v452_v6 = vld [vmem:[%s2066_s3 + $0x60] sm:$0xff]  ;;  %v459_v8 = vld [vmem:[%s2066_s3 + $0x98] sm:$0xff]  ;;  %v458_v11 = vld [vmem:[%s2066_s3 + $0x90] sm:$0xff]  ;;  %s1485_s23 = scalar_lea.vmem %s2063_s0, %s1149_s30  ;;  %vm962_vm4 = vcmask 195584  }
  0x18   : > { %472 = vmatpush.msra.mxu0 %v454_v2  ;;  %v529_v7 = vld [vmem:[%s2067_s4 + $0x60] sm:$0xff]  ;;  %v451_v9 = vld [vmem:[%s2066_s3 + $0x58] sm:$0xff]  ;;  %506 = vmatpush.msra.mxu1 %v459_v8  ;;  %v457_v12 = vld [vmem:[%s2066_s3 + $0x88] sm:$0xff]  ;;  %s1632_s16 = scalar_select %p431_p11, %s1352_s25, 1 }
  0x19   : > { %542 = vmatpush.msra.mxu2 %v531_v3  ;;  %v528_v10 = vld [vmem:[%s2067_s4 + $0x58] sm:$0xff]  ;;  %v450_v13 = vld [vmem:[%s2066_s3 + $0x50] sm:$0xff]  ;;  %v456_v15 = vld [vmem:[%s2066_s3 + $0x80] sm:$0xff] }
  0x1a   : > { %473 = vmatpush.msra.mxu0 %v453_v4  ;;  %v527_v14 = vld [vmem:[%s2067_s4 + $0x50] sm:$0xff]  ;;  %507 = vmatpush.msra.mxu1 %v458_v11  ;;  %v449_v16 = vld [vmem:[%s2066_s3 + $0x48] sm:$0xff]  ;;  %v691_v18 = vld [vmem:[%s2065_s2 + $0xf8] sm:$0xff]  ;;  %s1150_s17 = sshll.u32 %s1632_s16, 6 }
  0x1b   : > { %543 = vmatpush.msra.mxu2 %v530_v5  ;;  %v526_v17 = vld [vmem:[%s2067_s4 + $0x48] sm:$0xff]  ;;  %v536_v19 = vld [vmem:[%s2067_s4 + $0x98] sm:$0xff]  ;;  %v448_v20 = vld [vmem:[%s2066_s3 + $0x40] sm:$0xff]  ;;  %808 = vmatpush.msra.mxu3 %v691_v18  ;;  %s1683_s28 = scalar_lea.vmem %s2064_s1, %s1150_s17  ;;  %s1265_s17 = smov 16  }
  0x1c   : > { %474 = vmatpush.msra.mxu0 %v452_v6  ;;  %508 = vmatpush.msra.mxu1 %v457_v12  ;;  %v525_v21 = vld [vmem:[%s2067_s4 + $0x40] sm:$0xff]  ;;  %v690_v22 = vld [vmem:[%s2065_s2 + $0xf0] sm:$0xff]  ;;  %v447_v24 = vld [vmem:[%s2066_s3 + $0x38] sm:$0xff] }
  0x1d   : > { %544 = vmatpush.msra.mxu2 %v529_v7  ;;  %v535_v23 = vld [vmem:[%s2067_s4 + $0x90] sm:$0xff]  ;;  %v524_v25 = vld [vmem:[%s2067_s4 + $0x38] sm:$0xff]  ;;  %809 = vmatpush.msra.mxu3 %v690_v22  ;;  %v689_v26 = vld [vmem:[%s2065_s2 + $0xe8] sm:$0xff] }
  0x1e   : > { %475 = vmatpush.msra.mxu0 %v451_v9  ;;  %509 = vmatpush.msra.mxu1 %v456_v15  ;;  %v534_v27 = vld [vmem:[%s2067_s4 + $0x88] sm:$0xff]  ;;  %v688_v28 = vld [vmem:[%s2065_s2 + $0xe0] sm:$0xff]  ;;  %v446_v29 = vld [vmem:[%s2066_s3 + $0x30] sm:$0xff] }
  0x1f   : > { %545 = vmatpush.msra.mxu2 %v528_v10  ;;  %v523_v30 = vld [vmem:[%s2067_s4 + $0x30] sm:$0xff]  ;;  %810 = vmatpush.msra.mxu3 %v689_v26  ;;  %v533_v31 = vld [vmem:[%s2067_s4 + $0x80] sm:$0xff]  ;;  %v687_v32 = vld [vmem:[%s2065_s2 + $0xd8] sm:$0xff] }
  0x20   : > { %476 = vmatpush.msra.mxu0 %v450_v13  ;;  %576 = vmatpush.msrb.mxu1 %v536_v19  ;;  %v445_v33 = vld [vmem:[%s2066_s3 + $0x28] sm:$0xff]  ;;  %v686_v36 = vld [vmem:[%s2065_s2 + $0xd0] sm:$0xff]  ;;  %v444_v37 = vld [vmem:[%s2066_s3 + $0x20] sm:$0xff] }
  0x21   : > { %546 = vmatpush.msra.mxu2 %v527_v14  ;;  %v522_v34 = vld [vmem:[%s2067_s4 + $0x28] sm:$0xff]  ;;  %811 = vmatpush.msra.mxu3 %v688_v28  ;;  %v521_v38 = vld [vmem:[%s2067_s4 + $0x20] sm:$0xff]  ;;  %v675_v39 = vld [vmem:[%s2065_s2 + $0x78] sm:$0xff] }
  0x22   : > { %477 = vmatpush.msra.mxu0 %v449_v16  ;;  %577 = vmatpush.msrb.mxu1 %v535_v23  ;;  %v1500_v35 = vld [vmem:[%s1485_s23 + $0x8] sm:$0xff]  ;;  %v443_v41 = vld [vmem:[%s2066_s3 + $0x18] sm:$0xff]  ;;  %v674_v43 = vld [vmem:[%s2065_s2 + $0x70] sm:$0xff] }
  0x23   : > { %547 = vmatpush.msra.mxu2 %v526_v17  ;;  %812 = vmatpush.msra.mxu3 %v687_v32  ;;  %v685_v40 = vld [vmem:[%s2065_s2 + $0xc8] sm:$0xff]  ;;  %v520_v42 = vld [vmem:[%s2067_s4 + $0x18] sm:$0xff]  ;;  %v684_v44 = vld [vmem:[%s2065_s2 + $0xc0] sm:$0xff] }
  0x24   : > { %478 = vmatpush.msra.mxu0 %v448_v20  ;;  %578 = vmatpush.msrb.mxu1 %v534_v27  ;;  %v442_v45 = vld [vmem:[%s2066_s3 + $0x10] sm:$0xff]  ;;  %v673_v47 = vld [vmem:[%s2065_s2 + $0x68] sm:$0xff]  ;;  %v683_v48 = vld [vmem:[%s2065_s2 + $0xb8] sm:$0xff] }
  0x25   : > { %548 = vmatpush.msra.mxu2 %v525_v21  ;;  %1142 = vmatmul.msk.f32.vlgmr.msra.gmra.mxu1 %vm464_vm0, %v1500_v35  ;;  %v519_v46 = vld [vmem:[%s2067_s4 + $0x10] sm:$0xff]  ;;  %v441_v49 = vld [vmem:[%s2066_s3 + $0x8] sm:$0xff]  ;;  %v672_v51 = vld [vmem:[%s2065_s2 + $0x60] sm:$0xff] }
  0x26   : > { %479 = vmatpush.msra.mxu0 %v447_v24  ;;  %579 = vmatpush.msrb.mxu1 %v533_v31  ;;  %v518_v50 = vld [vmem:[%s2067_s4 + $0x8] sm:$0xff]  ;;  %v682_v52 = vld [vmem:[%s2065_s2 + $0xb0] sm:$0xff]  ;;  %v440_v53 = vld [vmem:[%s2066_s3] sm:$0xff] }
  0x27   : > { %549 = vmatpush.msra.mxu2 %v524_v25  ;;  %813 = vmatpush.msra.mxu3 %v686_v36  ;;  %v517_v54 = vld [vmem:[%s2067_s4] sm:$0xff]  ;;  %v723_v56 = vld [vmem:[%s2065_s2 + $0x1f8] sm:$0xff]  ;;  %v722_v59 = vld [vmem:[%s2065_s2 + $0x1f0] sm:$0xff] }
  0x28   : > { %480 = vmatpush.msra.mxu0 %v446_v29  ;;  %788 = vmatpush.msra.mxu1 %v675_v39  ;;  %v1562_v55 = vld [vmem:[%s1485_s23] sm:$0xff]  ;;  %v707_v57 = vld [vmem:[%s2065_s2 + $0x178] sm:$0xff]  ;;  %v681_v60 = vld [vmem:[%s2065_s2 + $0xa8] sm:$0xff] }
  0x29   : > { %550 = vmatpush.msra.mxu2 %v523_v30  ;;  %814 = vmatpush.msra.mxu3 %v685_v40  ;;  %v671_v58 = vld [vmem:[%s2065_s2 + $0x58] sm:$0xff]  ;;  %v706_v61 = vld [vmem:[%s2065_s2 + $0x170] sm:$0xff]  ;;  %v721_v63 = vld [vmem:[%s2065_s2 + $0x1e8] sm:$0xff] }
  0x2a   : > { %481 = vmatpush.msra.mxu0 %v445_v33  ;;  %789 = vmatpush.msra.mxu1 %v674_v43  ;;  %v670_v62 = vld [vmem:[%s2065_s2 + $0x50] sm:$0xff]  ;;  %v680_v0 = vld [vmem:[%s2065_s2 + $0xa0] sm:$0xff]  ;;  %v705_v1 = vld [vmem:[%s2065_s2 + $0x168] sm:$0xff] }
  0x2b   : > { %551 = vmatpush.msra.mxu2 %v522_v34  ;;  %815 = vmatpush.msra.mxu3 %v684_v44  ;;  %v669_v2 = vld [vmem:[%s2065_s2 + $0x48] sm:$0xff]  ;;  %v720_v3 = vld [vmem:[%s2065_s2 + $0x1e0] sm:$0xff]  ;;  %v679_v4 = vld [vmem:[%s2065_s2 + $0x98] sm:$0xff] }
  0x2c   : > { %482 = vmatpush.msra.mxu0 %v444_v37  ;;  %790 = vmatpush.msra.mxu1 %v673_v47  ;;  %v704_v5 = vld [vmem:[%s2065_s2 + $0x160] sm:$0xff]  ;;  %v719_v7 = vld [vmem:[%s2065_s2 + $0x1d8] sm:$0xff]  ;;  %v678_v8 = vld [vmem:[%s2065_s2 + $0x90] sm:$0xff] }
  0x2d   : > { %552 = vmatpush.msra.mxu2 %v521_v38  ;;  %816 = vmatpush.msra.mxu3 %v683_v48  ;;  %v668_v6 = vld [vmem:[%s2065_s2 + $0x40] sm:$0xff]  ;;  %v703_v9 = vld [vmem:[%s2065_s2 + $0x158] sm:$0xff]  ;;  %v718_v11 = vld [vmem:[%s2065_s2 + $0x1d0] sm:$0xff] }
  0x2e   : > { %483 = vmatpush.msra.mxu0 %v443_v41  ;;  %791 = vmatpush.msra.mxu1 %v672_v51  ;;  %v667_v10 = vld [vmem:[%s2065_s2 + $0x38] sm:$0xff]  ;;  %v1627_v12 = vld [vmem:[%s1485_s23 + $0x10] sm:$0xff]  ;;  %v717_v15 = vld [vmem:[%s2065_s2 + $0x1c8] sm:$0xff] }
  0x2f   : > { %553 = vmatpush.msra.mxu2 %v520_v42  ;;  %817 = vmatpush.msra.mxu3 %v682_v52  ;;  %v702_v13 = vld [vmem:[%s2065_s2 + $0x150] sm:$0xff]  ;;  %v1644_v16 = vld [vmem:[%s1485_s23 + $0x18] sm:$0xff]  ;;  %v701_v17 = vld [vmem:[%s2065_s2 + $0x148] sm:$0xff]  ;;  %s1219_s23 = scalar_lea.hbm %s2075_s12, 2 }
  0x30   : > { %484 = vmatpush.msra.mxu0 %v442_v45  ;;  %792 = vmatpush.msra.mxu1 %v671_v58  ;;  %v666_v14 = vld [vmem:[%s2065_s2 + $0x30] sm:$0xff]  ;;  %v665_v18 = vld [vmem:[%s2065_s2 + $0x28] sm:$0xff]  ;;  %v716_v19 = vld [vmem:[%s2065_s2 + $0x1c0] sm:$0xff] }
  0x31   : > { %554 = vmatpush.msra.mxu2 %v519_v46  ;;  %818 = vmatpush.msra.mxu3 %v681_v60  ;;  %v677_v20 = vld [vmem:[%s2065_s2 + $0x88] sm:$0xff]  ;;  %v700_v21 = vld [vmem:[%s2065_s2 + $0x140] sm:$0xff]  ;;  %v715_v23 = vld [vmem:[%s2065_s2 + $0x1b8] sm:$0xff] }
  0x32   : > { %485 = vmatpush.msra.mxu0 %v441_v49  ;;  %793 = vmatpush.msra.mxu1 %v670_v62  ;;  %v664_v22 = vld [vmem:[%s2065_s2 + $0x20] sm:$0xff]  ;;  %v699_v25 = vld [vmem:[%s2065_s2 + $0x138] sm:$0xff]  ;;  %v714_v27 = vld [vmem:[%s2065_s2 + $0x1b0] sm:$0xff] }
  0x33   : > { %555 = vmatpush.msra.mxu2 %v518_v50  ;;  %819 = vmatpush.msra.mxu3 %v680_v0  ;;  %v676_v24 = vld [vmem:[%s2065_s2 + $0x80] sm:$0xff]  ;;  %v663_v26 = vld [vmem:[%s2065_s2 + $0x18] sm:$0xff]  ;;  %v698_v29 = vld [vmem:[%s2065_s2 + $0x130] sm:$0xff] }
  0x34   : > { %486 = vmatpush.msra.mxu0 %v440_v53  ;;  %794 = vmatpush.msra.mxu1 %v669_v2  ;;  %v755_v28 = vld [vmem:[%s2065_s2 + $0x2f8] sm:$0xff]  ;;  %v713_v30 = vld [vmem:[%s2065_s2 + $0x1a8] sm:$0xff]  ;;  %v662_v31 = vld [vmem:[%s2065_s2 + $0x10] sm:$0xff] }
  0x35   : > { %556 = vmatpush.msra.mxu2 %v517_v54  ;;  %487 = vmatmul.f32.vlgmr.msra.gmra.mxu0 %v1562_v55  ;;  %v588_v32 = vld [vmem:[%s1683_s28 + $0x8] sm:$0x1f]  ;;  %v754_v34 = vld [vmem:[%s2065_s2 + $0x2f0] sm:$0xff]  ;;  %v712_v37 = vld [vmem:[%s2065_s2 + $0x1a0] sm:$0xff] }
  0x36   : > { %828 = vmatpush.msrb.mxu0 %v707_v57  ;;  %820 = vmatpush.msra.mxu3 %v679_v4  ;;  %v697_v33 = vld [vmem:[%s2065_s2 + $0x128] sm:$0xff]  ;;  %v603_v36 = vsel %vm595_vm1, %v588_v32, 0.0  ;;  %v696_v39 = vld [vmem:[%s2065_s2 + $0x120] sm:$0xff]  ;;  %v590_v42 = vld [vmem:[%s1683_s28 + $0x18] sm:$0x1f] }
  0x37   : > { %848 = vmatpush.msrb.mxu2 %v723_v56  ;;  %795 = vmatpush.msra.mxu1 %v668_v6  ;;  %v661_v38 = vld [vmem:[%s2065_s2 + $0x8] sm:$0xff]  ;;  %v604_v40 = vrot.slane %v603_v36, 4  ;;  %v587_v41 = vld [vmem:[%s1683_s28] sm:$0x1f]  ;;  %v711_v43 = vld [vmem:[%s2065_s2 + $0x198] sm:$0xff]  ;;  %v617_v48 = vsel %vm595_vm1, %v590_v42, 0.0 }
  0x38   : > { %829 = vmatpush.msrb.mxu0 %v706_v61  ;;  %821 = vmatpush.msra.mxu3 %v678_v8  ;;  %v660_v44 = vld [vmem:[%s2065_s2] sm:$0xff]  ;;  %v596_v45 = vsel %vm595_vm1, %v587_v41, 0.0  ;;  %v695_v46 = vld [vmem:[%s2065_s2 + $0x118] sm:$0xff]  ;;  %v710_v49 = vld [vmem:[%s2065_s2 + $0x190] sm:$0xff]  ;;  %v618_v58 = vrot.slane %v617_v48, 4 }
  0x39   : > { %849 = vmatpush.msrb.mxu2 %v722_v59  ;;  %796 = vmatpush.msra.mxu1 %v667_v10  ;;  %v739_v47 = vld [vmem:[%s2065_s2 + $0x278] sm:$0xff]  ;;  %v753_v50 = vld [vmem:[%s2065_s2 + $0x2e8] sm:$0xff]  ;;  %v589_v51 = vld [vmem:[%s1683_s28 + $0x10] sm:$0x1f]  ;;  %v605_v54 = vadd.f32 %v604_v40, %v603_v36 }
  0x3a   : > { %830 = vmatpush.msrb.mxu0 %v705_v1  ;;  %1143 = vmatmul.msk.f32.gmra.mxu1 %vm464_vm0, %v1644_v16  ;;  %v694_v52 = vld [vmem:[%s2065_s2 + $0x110] sm:$0xff]  ;;  %v592_v56 = vld [vmem:[%s1683_s28 + $0x28] sm:$0x1f]  ;;  %v752_v57 = vld [vmem:[%s2065_s2 + $0x2e0] sm:$0xff]  ;;  %v610_v61 = vsel %vm595_vm1, %v589_v51, 0.0  ;;  %v619_v8 = vadd.f32 %v618_v58, %v617_v48 }
  0x3b   : > { %850 = vmatpush.msrb.mxu2 %v721_v63  ;;  %797 = vmatpush.msra.mxu1 %v666_v14  ;;  %v738_v53 = vld [vmem:[%s2065_s2 + $0x270] sm:$0xff]  ;;  %v693_v59 = vld [vmem:[%s2065_s2 + $0x108] sm:$0xff]  ;;  %v708_v62 = vld [vmem:[%s2065_s2 + $0x180] sm:$0xff]  ;;  %v631_v1 = vsel %vm595_vm1, %v592_v56, 0.0 }
  0x3c   : > { %831 = vmatpush.msrb.mxu0 %v704_v5  ;;  %822 = vmatpush.msra.mxu3 %v677_v20  ;;  %v737_v60 = vld [vmem:[%s2065_s2 + $0x268] sm:$0xff]  ;;  %v787_v63 = vld [vmem:[%s2065_s2 + $0x3f8] sm:$0xff]  ;;  %v692_v2 = vld [vmem:[%s2065_s2 + $0x100] sm:$0xff] }
  0x3d   : > { %851 = vmatpush.msrb.mxu2 %v720_v3  ;;  %490 = vmatmul.f32.gmra.mxu0 %v1627_v12  ;;  %v751_v0 = vld [vmem:[%s2065_s2 + $0x2d8] sm:$0xff]  ;;  %v606_v3 = vrot.slane %v605_v54, 2  ;;  %v591_v5 = vld [vmem:[%s1683_s28 + $0x20] sm:$0x1f]  ;;  %v786_v10 = vld [vmem:[%s2065_s2 + $0x3f0] sm:$0xff] }
  0x3e   : > { %832 = vmatpush.msrb.mxu0 %v703_v9  ;;  %798 = vmatpush.msra.mxu1 %v665_v18  ;;  %v771_v6 = vld [vmem:[%s2065_s2 + $0x378] sm:$0xff]  ;;  %v611_v9 = vrot.slane %v610_v61, 4  ;;  %v624_v18 = vsel %vm595_vm1, %v591_v5, 0.0  ;;  %v749_v20 = vld [vmem:[%s2065_s2 + $0x2c8] sm:$0xff]  ;;  %v748_v32 = vld [vmem:[%s2065_s2 + $0x2c0] sm:$0xff] }
  0x3f   : > { %852 = vmatpush.msrb.mxu2 %v719_v7  ;;  %823 = vmatpush.msra.mxu3 %v676_v24  ;;  %v736_v7 = vld [vmem:[%s2065_s2 + $0x260] sm:$0xff]  ;;  %v594_v14 = vld [vmem:[%s1683_s28 + $0x38] sm:$0x1f]  ;;  %v769_v24 = vld [vmem:[%s2065_s2 + $0x368] sm:$0xff] }
  0x40   : > { %833 = vmatpush.msrb.mxu0 %v702_v13  ;;  %799 = vmatpush.msra.mxu1 %v664_v22  ;;  %v632_v13 = vrot.slane %v631_v1, 4  ;;  %v783_v36 = vld [vmem:[%s2065_s2 + $0x3d8] sm:$0xff]  ;;  %v781_v51 = vld [vmem:[%s2065_s2 + $0x3c8] sm:$0xff] }
  0x41   : > { %853 = vmatpush.msrb.mxu2 %v718_v11  ;;  %888 = vmatpush.msrb.mxu3 %v755_v28  ;;  %v750_v11 = vld [vmem:[%s2065_s2 + $0x2d0] sm:$0xff]  ;;  %v784_v28 = vld [vmem:[%s2065_s2 + $0x3e0] sm:$0xff]  ;;  %v747_v41 = vld [vmem:[%s2065_s2 + $0x2b8] sm:$0xff] }
  0x42   : > { %834 = vmatpush.msrb.mxu0 %v701_v17  ;;  %800 = vmatpush.msra.mxu1 %v663_v26  ;;  %v735_v17 = vld [vmem:[%s2065_s2 + $0x258] sm:$0xff]  ;;  %v612_v26 = vadd.f32 %v611_v9, %v610_v61  ;;  %v745_v56 = vld [vmem:[%s2065_s2 + $0x2a8] sm:$0xff] }
  0x43   : > { %854 = vmatpush.msrb.mxu2 %v717_v15  ;;  %889 = vmatpush.msrb.mxu3 %v754_v34  ;;  %v770_v15 = vld [vmem:[%s2065_s2 + $0x370] sm:$0xff]  ;;  %v765_v58 = vld [vmem:[%s2065_s2 + $0x348] sm:$0xff]  ;;  %v763_v9 = vld [vmem:[%s2065_s2 + $0x338] sm:$0xff] }
  0x44   : > { %835 = vmatpush.msrb.mxu0 %v700_v21  ;;  %557 = vmatmul.f32.vlgmr.msra.gmra.mxu2 %v1562_v55  ;;  %v597_v55 = vrot.slane %v596_v45, 4  ;;  %v607_v21 = vadd.f32 %v606_v3, %v605_v54  ;;  %v729_v5 = vld [vmem:[%s2065_s2 + $0x228] sm:$0xff] }
  0x45   : > { %855 = vmatpush.msrb.mxu2 %v716_v19  ;;  %801 = vmatpush.msra.mxu1 %v662_v31  ;;  %v785_v19 = vld [vmem:[%s2065_s2 + $0x3e8] sm:$0xff]  ;;  %v625_v31 = vrot.slane %v624_v18, 4 }
  0x46   : > { %836 = vmatpush.msrb.mxu0 %v699_v25  ;;  %1144 = vmatmul.msk.f32.vlgmr.msrb.gmra.mxu1 %vm464_vm0, %v1500_v35  ;;  %v709_v35 = vld [vmem:[%s2065_s2 + $0x188] sm:$0xff]  ;;  %v598_v4 = vadd.f32 %v597_v55, %v596_v45  ;;  %v620_v25 = vrot.slane %v619_v8, 2  ;;  %v732_v45 = vld [vmem:[%s2065_s2 + $0x240] sm:$0xff]  ;;  %v731_v55 = vld [vmem:[%s2065_s2 + $0x238] sm:$0xff] }
  0x47   : > { %856 = vmatpush.msrb.mxu2 %v715_v23  ;;  %802 = vmatpush.msra.mxu1 %v661_v38  ;;  %v593_v23 = vld [vmem:[%s1683_s28 + $0x30] sm:$0x1f]  ;;  %v608_v38 = vrot.slane %v607_v21, 1  ;;  %s1062_s28 = scalar_lea.hbm %s2075_s12, %s1352_s25 }
  0x48   : > { %837 = vmatpush.msrb.mxu0 %v698_v29  ;;  %890 = vmatpush.msrb.mxu3 %v753_v50  ;;  %v599_v22 = vrot.slane %v598_v4, 2  ;;  %v734_v29 = vld [vmem:[%s2065_s2 + $0x250] sm:$0xff]  ;;  %v638_v34 = vsel %vm595_vm1, %v593_v23, 0.0  ;;  %v621_v42 = vadd.f32 %v620_v25, %v619_v8  ;;  %v743_v8 = vld [vmem:[%s2065_s2 + $0x298] sm:$0xff]  ;;  %s1066_s30 = sshll.u32 %s1062_s28, 4  ;;  %s1067_s30 = int_to_ptr.hbm [resolvable:$true] %s1066_s30 }
  0x49   : > { %857 = vmatpush.msrb.mxu2 %v714_v27  ;;  %803 = vmatpush.msra.mxu1 %v660_v44  ;;  %v645_v27 = vsel %vm595_vm1, %v594_v14, 0.0  ;;  %v782_v44 = vld [vmem:[%s2065_s2 + $0x3d0] sm:$0xff]  ;;  %v639_v48 = vrot.slane %v638_v34, 4  ;;  %s1213_s16 = sshra.s32 %s1067_s30, 4  ;;  %s1214_s16 = int_to_ptr.hbm [resolvable:$true] %s1213_s16 }
  0x4a   : > { %838 = vmatpush.msrb.mxu0 %v697_v33  ;;  %891 = vmatpush.msrb.mxu3 %v752_v57  ;;  %v768_v33 = vld [vmem:[%s2065_s2 + $0x360] sm:$0xff]  ;;  %v646_v40 = vrot.slane %v645_v27, 4  ;;  %v766_v50 = vld [vmem:[%s2065_s2 + $0x350] sm:$0xff]  ;;  %p1220_p1 = scmp.lt.s32.totalorder %s1214_s16, %s2075_s12 }
  0x4b   : > { %858 = vmatpush.msrb.mxu2 %v713_v30  ;;  %868 = vmatpush.msrb.mxu1 %v739_v47  ;;  %v633_v30 = vadd.f32 %v632_v13, %v631_v1  ;;  %v626_v47 = vadd.f32 %v625_v31, %v624_v18  ;;  %v764_v1 = vld [vmem:[%s2065_s2 + $0x340] sm:$0xff]  ;;  %v778_v14 = vld [vmem:[%s2065_s2 + $0x3b0] sm:$0xff] }
  0x4c   : > { %839 = vmatpush.msrb.mxu0 %v696_v39  ;;  %892 = vmatpush.msrb.mxu3 %v751_v0  ;;  %v600_v39 = vadd.f32 %v599_v22, %v598_v4  ;;  %v647_v54 = vadd.f32 %v646_v40, %v645_v27  ;;  %v744_v0 = vld [vmem:[%s2065_s2 + $0x2a0] sm:$0xff]  ;;  %v762_v18 = vld [vmem:[%s2065_s2 + $0x330] sm:$0xff] }
  0x4d   : > { %859 = vmatpush.msrb.mxu2 %v712_v37  ;;  %869 = vmatpush.msrb.mxu1 %v738_v53  ;;  %v733_v37 = vld [vmem:[%s2065_s2 + $0x248] sm:$0xff]  ;;  %v627_v61 = vrot.slane %v626_v47, 2  ;;  %v726_v31 = vld [vmem:[%s2065_s2 + $0x210] sm:$0xff] }
  0x4e   : > { %840 = vmatpush.msrb.mxu0 %v695_v46  ;;  %893 = vmatpush.msrb.mxu3 %v750_v11  ;;  %v634_v46 = vrot.slane %v633_v30, 2  ;;  %v601_v53 = vrot.slane %v600_v39, 1  ;;  %v648_v4 = vrot.slane %v647_v54, 2 }
  0x4f   : > { %860 = vmatpush.msrb.mxu2 %v711_v43  ;;  %870 = vmatpush.msrb.mxu1 %v737_v60  ;;  %v613_v43 = vrot.slane %v612_v26, 2  ;;  %v628_v11 = vadd.f32 %v627_v61, %v626_v47 }
  0x50   : > { %841 = vmatpush.msrb.mxu0 %v694_v52  ;;  %894 = vmatpush.msrb.mxu3 %v749_v20  ;;  %v609_v52 = vadd.f32 %v608_v38, %v607_v21  ;;  %v635_v60 = vadd.f32 %v634_v46, %v633_v30  ;;  %v649_v20 = vadd.f32 %v648_v4, %v647_v54  ;;  %v777_v21 = vld [vmem:[%s2065_s2 + $0x3a8] sm:$0xff]  ;;  %v776_v30 = vld [vmem:[%s2065_s2 + $0x3a0] sm:$0xff] }
  0x51   : > { %861 = vmatpush.msrb.mxu2 %v710_v49  ;;  %871 = vmatpush.msrb.mxu1 %v736_v7  ;;  %v746_v49 = vld [vmem:[%s2065_s2 + $0x2b0] sm:$0xff]  ;;  %v614_v57 = vadd.f32 %v613_v43, %v612_v26  ;;  %v629_v26 = vrot.slane %v628_v11, 1  ;;  %v773_v46 = vld [vmem:[%s2065_s2 + $0x388] sm:$0xff]  ;;  %v1193_v54 = vld [vmem:[%s2068_s5] ss:$0 sm:$0xff] }
  0x52   : > { %842 = vmatpush.msrb.mxu0 %v693_v59  ;;  %560 = vmatmul.f32.gmra.mxu2 %v1627_v12  ;;  %v767_v12 = vld [vmem:[%s2065_s2 + $0x358] sm:$0xff]  ;;  %v780_v59 = vld [vmem:[%s2065_s2 + $0x3c0] sm:$0xff]  ;;  %v653_v3 = vmul.f32 0.2, %v609_v52 }
  0x53   : > { %862 = vmatpush.msrb.mxu2 %v709_v35  ;;  %872 = vmatpush.msrb.mxu1 %v735_v17  ;;  %v622_v35 = vrot.slane %v621_v42, 1  ;;  %v615_v7 = vrot.slane %v614_v57, 1  ;;  %v742_v17 = vld [vmem:[%s2065_s2 + $0x290] sm:$0xff]  ;;  %v756_v52 = vld [vmem:[%s2065_s2 + $0x300] sm:$0xff] }
  0x54   : > { %843 = vmatpush.msrb.mxu0 %v692_v2  ;;  %895 = vmatpush.msrb.mxu3 %v748_v32  ;;  %v779_v2 = vld [vmem:[%s2065_s2 + $0x3b8] sm:$0xff]  ;;  %v650_v32 = vrot.slane %v649_v20, 1 }
  0x55   : > { %863 = vmatpush.msrb.mxu2 %v708_v62  ;;  %873 = vmatpush.msrb.mxu1 %v734_v29  ;;  %v640_v62 = vadd.f32 %v639_v48, %v638_v34  ;;  %v616_v23 = vadd.f32 %v615_v7, %v614_v57  ;;  %v761_v29 = vld [vmem:[%s2065_s2 + $0x328] sm:$0xff]  ;;  %v760_v34 = vld [vmem:[%s2065_s2 + $0x320] sm:$0xff] }
  0x56   : > { %908 = vmatpush.msra.mxu0 %v771_v6  ;;  %896 = vmatpush.msrb.mxu3 %v747_v41  ;;  %v623_v6 = vadd.f32 %v622_v35, %v621_v42  ;;  %v725_v41 = vld [vmem:[%s2065_s2 + $0x208] sm:$0xff]  ;;  %v774_v42 = vld [vmem:[%s2065_s2 + $0x390] sm:$0xff]  ;;  %v651_v43 = vadd.f32 %v650_v32, %v649_v20 }
  0x57   : > { %928 = vmatpush.msra.mxu2 %v787_v63  ;;  %874 = vmatpush.msrb.mxu1 %v733_v37  ;;  %v730_v63 = vld [vmem:[%s2065_s2 + $0x230] sm:$0xff]  ;;  %v641_v13 = vrot.slane %v640_v62, 2  ;;  %v775_v37 = vld [vmem:[%s2065_s2 + $0x398] sm:$0xff] }
  0x58   : > { %909 = vmatpush.msra.mxu0 %v770_v15  ;;  %897 = vmatpush.msrb.mxu3 %v746_v49  ;;  %v728_v15 = vld [vmem:[%s2065_s2 + $0x220] sm:$0xff]  ;;  %v655_v22 = vmul.f32 0.2, %v623_v6  ;;  %v757_v49 = vld [vmem:[%s2065_s2 + $0x308] sm:$0xff] }
  0x59   : > { %929 = vmatpush.msra.mxu2 %v786_v10  ;;  %875 = vmatpush.msrb.mxu1 %v732_v45  ;;  %v636_v10 = vrot.slane %v635_v60, 1  ;;  %v642_v27 = vadd.f32 %v641_v13, %v640_v62  ;;  %v758_v45 = vld [vmem:[%s2065_s2 + $0x310] sm:$0xff]  ;;  %v1194_v62 = vld [vmem:[%s2069_s6] ss:$0 sm:$0xff] }
  0x5a   : > { %910 = vmatpush.msra.mxu0 %v769_v24  ;;  %1145 = vmatmul.msk.f32.gmra.mxu1 %vm464_vm0, %v1644_v16  ;;  %v602_v16 = vadd.f32 %v601_v53, %v600_v39  ;;  %v727_v24 = vld [vmem:[%s2065_s2 + $0x218] sm:$0xff]  ;;  %v630_v39 = vadd.f32 %v629_v26, %v628_v11  ;;  %v986_v26 = vld [vmem:[%s2071_s8] sm:$0xff] }
  0x5b   : > { %930 = vmatpush.msra.mxu2 %v785_v19  ;;  %876 = vmatpush.msrb.mxu1 %v731_v55  ;;  %v637_v25 = vadd.f32 %v636_v10, %v635_v60  ;;  %v643_v40 = vrot.slane %v642_v27, 1 }
  0x5c   : > { %911 = vmatpush.msra.mxu0 %v768_v33  ;;  %898 = vmatpush.msrb.mxu3 %v745_v56  ;;  %v652_v19 = vmul.f32 0.2, %v602_v16  ;;  %v740_v33 = vld [vmem:[%s2065_s2 + $0x280] sm:$0xff]  ;;  %v656_v47 = vmul.f32 0.2, %v630_v39 }
  0x5d   : > { %931 = vmatpush.msra.mxu2 %v784_v28  ;;  %877 = vmatpush.msrb.mxu1 %v730_v63  ;;  %v741_v28 = vld [vmem:[%s2065_s2 + $0x288] sm:$0xff]  ;;  %v657_v38 = vmul.f32 0.2, %v637_v25  ;;  %v644_v48 = vadd.f32 %v643_v40, %v642_v27  ;;  %v1025_v40 = vld [vmem:[%s2073_s10 + $0x50] sm:$0xff] }
  0x5e   : > { %912 = vmatpush.msra.mxu0 %v767_v12  ;;  %899 = vmatpush.msrb.mxu3 %v744_v0  ;;  %v759_v12 = vld [vmem:[%s2065_s2 + $0x318] sm:$0xff]  ;;  %v987_v25 = vld [vmem:[%s2071_s8 + $0x8] sm:$0xff] }
  0x5f   : > { %932 = vmatpush.msra.mxu2 %v783_v36  ;;  %824 = vmatmul.f32.vlgmr.msra.gmra.mxu3 %v653_v3  ;;  %v654_v36 = vmul.f32 0.2, %v616_v23  ;;  %v658_v53 = vmul.f32 0.2, %v644_v48  ;;  %v989_v23 = vld [vmem:[%s2071_s8 + $0x18] sm:$0xff]  ;;  %v974_v48 = vld [vmem:[%s2070_s7 + $0x8] sm:$0xff] }
  0x60   : > { %913 = vmatpush.msra.mxu0 %v766_v50  ;;  %878 = vmatpush.msrb.mxu1 %v729_v5  ;;  %v772_v50 = vld [vmem:[%s2065_s2 + $0x380] sm:$0xff] }
  0x61   : > { %933 = vmatpush.msra.mxu2 %v782_v44  ;;  %900 = vmatpush.msrb.mxu3 %v743_v8  ;;  %v724_v44 = vld [vmem:[%s2065_s2 + $0x200] sm:$0xff] }
  0x62   : > { %914 = vmatpush.msra.mxu0 %v765_v58  ;;  %879 = vmatpush.msrb.mxu1 %v728_v15 }
  0x63   : > { %934 = vmatpush.msra.mxu2 %v781_v51  ;;  %901 = vmatpush.msrb.mxu3 %v742_v17  ;;  %v659_v51 = vmul.f32 0.2, %v651_v43 }
  0x64   : > { %915 = vmatpush.msra.mxu0 %v764_v1  ;;  %804 = vmatmul.f32.vlgmr.msra.gmra.mxu1 %v652_v19 }
  0x65   : > { %935 = vmatpush.msra.mxu2 %v780_v59  ;;  %880 = vmatpush.msrb.mxu1 %v727_v24  ;;  %v988_v24 = vld [vmem:[%s2071_s8 + $0x10] sm:$0xff] }
  0x66   : > { %916 = vmatpush.msra.mxu0 %v763_v9  ;;  %864 = vmatmul.f32.vlgmr.msrb.gmra.mxu2 %v655_v22 }
  0x67   : > { %936 = vmatpush.msra.mxu2 %v779_v2  ;;  %902 = vmatpush.msrb.mxu3 %v741_v28  ;;  %v1030_v28 = vld [vmem:[%s2073_s10 + $0x78] sm:$0xff] }
  0x68   : > { %917 = vmatpush.msra.mxu0 %v762_v18  ;;  %881 = vmatpush.msrb.mxu1 %v726_v31 }
  0x69   : > { %937 = vmatpush.msra.mxu2 %v778_v14  ;;  %903 = vmatpush.msrb.mxu3 %v740_v33  ;;  %v1027_v33 = vld [vmem:[%s2073_s10 + $0x60] sm:$0xff] }
  0x6a   : > { %918 = vmatpush.msra.mxu0 %v761_v29  ;;  %904 = vmatmul.f32.vlgmr.msrb.gmra.mxu3 %v657_v38  ;;  %v1029_v29 = vld [vmem:[%s2073_s10 + $0x70] sm:$0xff]  ;;  %v1026_v38 = vld [vmem:[%s2073_s10 + $0x58] sm:$0xff] }
  0x6b   : > { %938 = vmatpush.msra.mxu2 %v777_v21  ;;  %844 = vmatmul.f32.vlgmr.msrb.gmra.mxu0 %v654_v36 }
  0x6c   : > { %919 = vmatpush.msra.mxu0 %v760_v34  ;;  %882 = vmatpush.msrb.mxu1 %v725_v41 }
  0x6d   : > { %939 = vmatpush.msra.mxu2 %v776_v30  ;;  %1032 = vmatpush.msra.mxu3 %v1030_v28  ;;  %v1028_v30 = vld [vmem:[%s2073_s10 + $0x68] sm:$0xff] }
  0x6e   : > { %920 = vmatpush.msra.mxu0 %v759_v12  ;;  %883 = vmatpush.msrb.mxu1 %v724_v44 }
  0x6f   : > { %940 = vmatpush.msra.mxu2 %v775_v37  ;;  %884 = vmatmul.f32.vlgmr.msrb.gmra.mxu1 %v656_v47  ;;  %v973_v47 = vld [vmem:[%s2070_s7] sm:$0xff] }
  0x70   : > { %921 = vmatpush.msra.mxu0 %v758_v45  ;;  %1006 = vmatpush.msra.mxu1 %v989_v23 }
  0x71   : > { %941 = vmatpush.msra.mxu2 %v774_v42  ;;  %1033 = vmatpush.msra.mxu3 %v1029_v29  ;;  %v1024_v42 = vld [vmem:[%s2073_s10 + $0x48] sm:$0xff] }
  0x72   : > { %922 = vmatpush.msra.mxu0 %v757_v49  ;;  %1007 = vmatpush.msra.mxu1 %v988_v24  ;;  %v1023_v49 = vld [vmem:[%s2073_s10 + $0x40] sm:$0xff] }
  0x73   : > { %942 = vmatpush.msra.mxu2 %v773_v46  ;;  %1034 = vmatpush.msra.mxu3 %v1028_v30 }
  0x74   : > { %923 = vmatpush.msra.mxu0 %v756_v52  ;;  %1008 = vmatpush.msra.mxu1 %v987_v25  ;;  %v1022_v52 = vld [vmem:[%s2073_s10 + $0x38] sm:$0xff] }
  0x75   : > { %943 = vmatpush.msra.mxu2 %v772_v50  ;;  %924 = vmatmul.f32.vlgmr.msra.gmra.mxu0 %v658_v53 }
  0x76   : > { %944 = vmatmul.f32.vlgmr.msra.gmra.mxu2 %v659_v51  ;;  %1009 = vmatpush.msra.mxu1 %v986_v26 }
  0x77   : > { %1035 = vmatpush.msra.mxu3 %v1027_v33 }
  0x79   : > { %1036 = vmatpush.msra.mxu3 %v1026_v38 }
  0x7b   : > { %1037 = vmatpush.msra.mxu3 %v1025_v40 }
  0x7d   : > { %1038 = vmatpush.msra.mxu3 %v1024_v42 }
  0x7f   : > { %1039 = vmatpush.msra.mxu3 %v1023_v49 }
  0x81   : > { %1040 = vmatpush.msra.mxu3 %v1022_v52 }
  0xa2   : > { %v511_v35 = vpop.f32.mrf.mxu1 }
  0xb2   : > { %v488_v55 = vpop.f32.mrf.mxu0 }
  0xb3   : > { %v489_v56 = vadd.f32 %v1193_v54, %v488_v55  ;;  %v1021_v55 = vld [vmem:[%s2073_s10 + $0x30] sm:$0xff] }
  0xb4   : > { %1041 = vmatpush.msra.mxu3 %v1021_v55 }
  0xb5   : > { %v512_v57 = vadd.f32 %v511_v35, %v489_v56 }
  0xb7   : > { %v514_v60 = vpop.f32.mrf.mxu1  ;;  %1195 = vtanh.f32 %v512_v57 }
  0xba   : > { %v491_v58 = vpop.f32.mrf.mxu0 }
  0xbb   : > { %v492_v59 = vadd.f32 %v1193_v54, %v491_v58  ;;  %v1020_v58 = vld [vmem:[%s2073_s10 + $0x28] sm:$0xff] }
  0xbc   : > { %1042 = vmatpush.msra.mxu3 %v1020_v58 }
  0xbd   : > { %v515_v61 = vadd.f32 %v514_v60, %v492_v59  ;;  %v1196_v43 = vpop.eup %1195  ;;  %v1019_v60 = vld [vmem:[%s2073_s10 + $0x20] sm:$0xff] }
  0xbe   : > { %1043 = vmatpush.msra.mxu3 %v1019_v60 }
  0xbf   : > { %1197 = vtanh.f32 %v515_v61 }
  0xc3   : > { %v581_v0 = vpop.f32.mrf.mxu1 }
  0xc5   : > { %v1198_v46 = vpop.eup %1197 }
  0xc7   : > { %v558_v63 = vpop.f32.mrf.mxu2 }
  0xc8   : > { %v559_v1 = vadd.f32 %v1194_v62, %v558_v63 }
  0xca   : > { %v582_v2 = vadd.f32 %v581_v0, %v559_v1 }
  0xd5   : > { %v561_v3 = vpop.f32.mrf.mxu2 }
  0xd6   : > { %v562_v16 = vadd.f32 %v1194_v62, %v561_v3  ;;  %v1018_v62 = vld [vmem:[%s2073_s10 + $0x18] sm:$0xff]  ;;  %v1017_v3 = vld [vmem:[%s2073_s10 + $0x10] sm:$0xff] }
  0xd7   : > { %v584_v4 = vpop.f32.mrf.mxu1  ;;  %1044 = vmatpush.msra.mxu3 %v1018_v62 }
  0xd8   : > { %v585_v5 = vadd.f32 %v584_v4, %v562_v16  ;;  %v1016_v16 = vld [vmem:[%s2073_s10 + $0x8] sm:$0xff]  ;;  %v1015_v4 = vld [vmem:[%s2073_s10] sm:$0xff] }
  0xd9   : > { %1045 = vmatpush.msra.mxu3 %v1017_v3 }
  0xdb   : > { %1046 = vmatpush.msra.mxu3 %v1016_v16 }
  0xdd   : > { %1047 = vmatpush.msra.mxu3 %v1015_v4 }
  0xe1   : > { %v805_v6 = vpop.f32.mrf.mxu1 }
  0xe2   : > { %v825_v7 = vpop.f32.mrf.mxu3 }
  0xe3   : > { %v826_v8 = vadd.f32 %v825_v7, %v805_v6 }
  0xe8   : > { %v845_v9 = vpop.f32.mrf.mxu0 }
  0xe9   : > { %v846_v10 = vadd.f32 %v845_v9, %v826_v8  ;;  %v865_v11 = vpop.f32.mrf.mxu2  ;;  %v1031_v9 = vld [vmem:[%s2074_s11] sm:$0x1] }
  0xeb   : > { %v866_v13 = vadd.f32 %v865_v11, %v846_v10 }
  0xec   : > { %v885_v14 = vpop.f32.mrf.mxu1 }
  0xed   : > { %v886_v15 = vadd.f32 %v885_v14, %v866_v13  ;;  %v905_v17 = vpop.f32.mrf.mxu3 }
  0xef   : > { %v906_v18 = vadd.f32 %v905_v17, %v886_v15 }
  0xf2   : > { %v925_v19 = vpop.f32.mrf.mxu0 }
  0xf3   : > { %v926_v20 = vadd.f32 %v925_v19, %v906_v18 }
  0xf9   : > { %v945_v21 = vpop.f32.mrf.mxu2 }
  0xfa   : > { %v946_v22 = vadd.f32 %v945_v21, %v926_v20 }
  0xfc   : > { %955 = vrot.lane.b32.xlu1 %v946_v22, %s1263_s19  ;;  %949 = vrot.lane.b32.xlu0 %v946_v22, %s1264_s27  ;;  %s422_s27 = sand.u32 1, %s1253_s22   ;;  %s1215_s19 = scalar_lea.hbm %s1214_s16, 1 }
  0xfd   : > { %s423_s29 = scalar_lea.vmem [#allocation2], %s422_s27  ;;  %s1054_s18 = scalar_lea.sflag [#allocation3], %s422_s27 }
  0xfe   : > { %s1064_s15 = sshll.u32 %s423_s29, 4  ;;  %p1216_p12 = scmp.ne.s32.totalorder %s1214_s16, %s1215_s19  ;;  %s1065_s15 = int_to_ptr.vmem [resolvable:$true] %s1064_s15 }
  0xff   : > { %p1221_p2 = scmp.lt.s32.totalorder %s1219_s23, %s1215_s19 }
 0x100   : > { %p1217_p13 = pnand %p1216_p12, %p1369_p5 }
 0x101   : > { %p1222_p3 = por %p1221_p2, %p1220_p1 }
 0x102   : > { %p1218_p0 = pneg %p1217_p13 }
 0x104   : > { %952 = vrot.lane.b32.xlu0 %v946_v22, %s1265_s17  ;;  %p1223_p4 = pnand %p1222_p3, %p1218_p0 }
 0x16e   : > { %v950_v27 = vpop.permute.xlu0 %949  ;;  %v956_v34 = vpop.permute.xlu1 %955 }
 0x16f   : > { %v959_v31 = vsel %vm958_vm2, %v946_v22, %v950_v27 }
 0x176   : > { %v953_v32 = vpop.permute.xlu0 %952 }
 0x177   : > { %v961_v36 = vsel %vm960_vm3, %v959_v31, %v953_v32 }
 0x178   : > { %v963_v37 = vsel %vm962_vm4, %v961_v36, %v956_v34 }
 0x179   : > { %v966_v39 = vperm.slane %v963_v37, 0 }
 0x17b   : > { %v967_v41 = vadd.f32 %v966_v39, %v582_v2  ;;  %v968_v12 = vadd.f32 %v966_v39, %v585_v5  ;;  %v990_v5 = vld [vmem:[%s2072_s9] sm:$0x1] }
 0x17d   : > { %v969_v44 = vmax.f32 %v967_v41, 0.0  ;;  %v970_v45 = vmax.f32 %v968_v12, 0.0 }
 0x17f   : > { %v971_v50 = vmul.f32 %v1196_v43, %v969_v44  ;;  %v972_v51 = vmul.f32 %v1198_v46, %v970_v45 }
 0x181   : > { %v975_v53 = vadd.f32 %v973_v47, %v971_v50  ;;  %v976_v54 = vadd.f32 %v974_v48, %v972_v51 }
 0x183   : > { %v977_v56 = vsel %vm464_vm0, %v975_v53, -inf  ;;  %v978_v35 = vsel %vm464_vm0, %v976_v54, -inf }
 0x184   : > { %v979_v57 = vmax.f32 %v977_v56, %v978_v35 }
 0x186   : > { %v980_v59 = vrot.slane %v979_v57, 4 }
 0x188   : > { %v981_v61 = vmax.f32 %v979_v57, %v980_v59 }
 0x18a   : > { %v982_v63 = vrot.slane %v981_v61, 2 }
 0x18c   : > { %v983_v0 = vmax.f32 %v981_v61, %v982_v63 }
 0x18e   : > { %v984_v1 = vrot.slane %v983_v0, 1 }
 0x190   : > { %v985_v2 = vmax.f32 %v983_v0, %v984_v1 }
 0x192   : > { %1146 = vmatmul.msk.f32.vlgmr.msra.gmra.mxu1 %vm464_vm0, %v985_v2 }
 0x20f   : > { %v1011_v6 = vpop.f32.mrf.mxu1 }
 0x210   : > { %v1012_v7 = vadd.f32 %v1011_v6, %v990_v5 }
 0x212   : > { %v1014_v8 = vmax.f32 %v1012_v7, 0.0 }
 0x214   : > { %1048 = vmatmul.f32.vlgmr.msra.gmra.mxu3 %v1014_v8 }
 0x297   : > { %v1049_v10 = vpop.f32.mrf.mxu3 }
 0x298   : > { %v1050_v11 = vadd.f32 %v1049_v10, %v1031_v9 }
 0x29a   : > { %1052 = vst [vmem:[%s423_s29] sm:$0x1] %v1050_v11 }
 0x29b   : > { %1226 = shalt.err (!%p1223_p4)
}
 0x29c   : > { %1151 = dma.vmem_to_hbm [thread:$0]  (%p1369_p5), %s1065_s15, 16, %s1067_s30, %s1054_s18  }
 0x29d PF: > { %p1157_p7 = scmp.ge.s32.totalorder %s1261_s24, 2  ;;  %s1078_s27 = sand.u32 1, %s1249_s21  }
 0x29e   : > { %s1079_s28 = scalar_lea.sflag [#allocation3], %s1078_s27 }
 0x29f   : > { %p1154_p8 = pnand %p1157_p7, %p1373_p6 }
 0x2a1   : > { %p1155_p9 = pneg %p1154_p8 }
 0x2a3   : > { %1244 = dma.done.wait (%p1155_p9), %s1079_s28, 16  }
 0x2a4   : > { %1246 = vsyncadd (%p1155_p9), %s1079_s28, 4294967280  ;;  %s2085_s24 = sld [smem:[#allocation6_spill]]  ;;  %s2088_s21 = smov %s1253_s22 }
 0x2a5   : > { %s2086_s29 = sld [smem:[#allocation5_spill]] }
 0x2a6   : > { %s2087_s23 = sld [smem:[#allocation7_spill]] }
 0x2aa   : > { %p22_p10 = scmp.ge.s32.totalorder %s2085_s24, 4  }
 0x2ab   : > { %s2089_s22 = smov %s2086_s29 }
 0x2ac   :  { %24 = sbr.rel (!%p22_p10) target bundleno = 3 (0x3), region = 106 }
 0x2b1   :  { %1084 = vsyncpa [#allocation3], 1 }
 0x2b2   :  { %1086 = vsyncpa [#allocation3 + $0x1], 1 }

</bundles_post_ra>
